<compile_context>
chip_gen: v7x
topology: tpu7x:2x2x1
jax: 0.10.0
libtpu: 0.0.40
codegen_flags: <defaults>
</compile_context>

<pallas_src>
import math

import jax
import jax.numpy as jnp
from jax.experimental import pallas as pl
from jax.experimental.pallas import tpu as pltpu


def _round_up(x: int, m: int) -> int:
    return ((x + m - 1) // m) * m


def _sublane_gran(dtype) -> int:
    # 8 for 4-byte dtypes, 16 for bf16/f16, 32 for 1-byte dtypes.
    return max(8, 32 // jnp.dtype(dtype).itemsize)


def _pick_tile(extent: int, gran: int, max_tile: int, min_tile: int):
    """Pick a tile size (multiple of `gran`, in [min_tile, max_tile]) that
    minimizes the padded extent; ties broken toward the larger tile."""
    ext_g = _round_up(max(extent, 1), gran)
    hi = max(gran, min(_round_up(max_tile, gran), ext_g))
    lo = max(gran, min(_round_up(min_tile, gran), hi))
    best = None
    for t in range(lo, hi + 1, gran):
        padded = _round_up(extent, t)
        key = (padded, -t)
        if best is None or key < best[0]:
            best = (key, t, padded)
    return best[1], best[2]


_VMEM_CAP = 48 * 1024 * 1024  # <= physical VMEM on v7x (64 MiB), fine on v5e/v6e


# --------------------------------------------------------------------------
# Path A: small per-batch Gram; several batches per grid step.
# --------------------------------------------------------------------------
def _batched_gram_body(x1_ref, x2_ref, out_ref):
    # x1_ref: (Bt, Na, D), x2_ref: (Bt, Ma, D), out_ref: (Bt, Na, Ma)
    out_ref[...] = jax.lax.dot_general(
        x1_ref[...],
        x2_ref[...],
        dimension_numbers=(((2,), (2,)), ((0,), (0,))),  # batch b, contract D
        preferred_element_type=jnp.float32,
    ).astype(out_ref.dtype)


# --------------------------------------------------------------------------
# Path B: tiled over (N, M, D); reduction axis last.
# --------------------------------------------------------------------------
def _make_tiled_body(tn: int, tm: int, out_dtype):
    def _partial(x1_ref, x2_ref):
        # x1_ref: (1, tn, tk), x2_ref: (1, tm, tk) -> (tn, tm)
        return jax.lax.dot_general(
            x1_ref[0],
            x2_ref[0],
            dimension_numbers=(((1,), (1,)), ((), ())),  # contract D: X1 @ X2^T
            preferred_element_type=jnp.float32,
        )

    if jnp.dtype(out_dtype) == jnp.dtype(jnp.float32):
        # Accumulate directly into the resident output block (no scratch).
        def body(x1_ref, x2_ref, out_ref):
            k = pl.program_id(3)

            @pl.when(k == 0)
            def _():
                out_ref[...] = jnp.zeros_like(out_ref)

            out_ref[0] += _partial(x1_ref, x2_ref)

        return body, []

    def body(x1_ref, x2_ref, out_ref, acc_ref):
        k = pl.program_id(3)

        @pl.when(k == 0)
        def _():
            acc_ref[...] = jnp.zeros_like(acc_ref)

        acc_ref[...] += _partial(x1_ref, x2_ref)

        @pl.when(k == pl.num_programs(3) - 1)
        def _():
            out_ref[0] = acc_ref[...].astype(out_ref.dtype)

    return body, [pltpu.VMEM((tn, tm), jnp.float32)]


# --------------------------------------------------------------------------
# Wrapper
# --------------------------------------------------------------------------
def linear_kernel(X1: jax.Array, X2: jax.Array) -> jax.Array:
    """Computes K[..., i, j] = <X1[..., i, :], X2[..., j, :]>."""
    if X1.shape[-1] != X2.shape[-1]:
        raise ValueError(
            f"Input vectors must have the same feature dimension. "
            f"Got X1 dim {X1.shape[-1]} and X2 dim {X2.shape[-1]}"
        )

    N, D = X1.shape[-2], X1.shape[-1]
    M = X2.shape[-2]

    # torch.matmul-style broadcasting over leading batch dims.
    batch_shape = jnp.broadcast_shapes(X1.shape[:-2], X2.shape[:-2])
    B = math.prod(batch_shape) if batch_shape else 1

    compute_dtype = jnp.promote_types(X1.dtype, X2.dtype)
    if not jnp.issubdtype(compute_dtype, jnp.floating):
        # TODO(synk): integer matmul is computed in f32 on the MXU; results can
        # deviate from exact integer semantics once sums exceed ~2^24.
        compute_dtype = jnp.dtype(jnp.float32)
    if jnp.dtype(compute_dtype) == jnp.dtype(jnp.float64):
        # TODO(synk): no f64 MXU path; compute in f32 instead.
        compute_dtype = jnp.dtype(jnp.float32)
    out_dtype = compute_dtype

    in_itemsize = jnp.dtype(compute_dtype).itemsize
    out_itemsize = jnp.dtype(out_dtype).itemsize
    sub = _sublane_gran(compute_dtype)

    # ----- Path-A orientation: put the larger of N/M on output lanes --------
    swap = (_round_up(M, 128) - M) > (_round_up(N, 128) - N)
    Na, Ma = (M, N) if swap else (N, M)
    na_pad = _round_up(Na, sub)
    ma_pad = _round_up(Ma, 128)
    small = (na_pad <= 512) and (ma_pad <= 512) and (D <= 1024)

    if small:
        # ---------------- Path A ----------------
        A_in, B_in = (X2, X1) if swap else (X1, X2)
        a = jnp.broadcast_to(A_in.astype(compute_dtype), (*batch_shape, Na, D))
        b = jnp.broadcast_to(B_in.astype(compute_dtype), (*batch_shape, Ma, D))
        a = a.reshape(B, Na, D)
        b = b.reshape(B, Ma, D)

        per_batch_bytes = (
            (na_pad * D + ma_pad * D) * in_itemsize + na_pad * ma_pad * out_itemsize
        )
        target_block_bytes = 8 * 1024 * 1024
        bt_max = max(1, min(B, target_block_bytes // max(per_batch_bytes, 1)))
        if B > 1:
            # Keep >= 2 grid steps so both v7x TensorCores receive work.
            bt_max = min(bt_max, -(-B // 2))
        steps = -(-B // bt_max)
        Bt = -(-B // steps)          # minimize batch padding
        B_pad = steps * Bt

        pads_a = ((0, B_pad - B), (0, na_pad - Na), (0, 0))
        pads_b = ((0, B_pad - B), (0, ma_pad - Ma), (0, 0))
        if any(p[1] for p in pads_a):
            a = jnp.pad(a, pads_a)
        if any(p[1] for p in pads_b):
            b = jnp.pad(b, pads_b)

        block_bytes = Bt * per_batch_bytes
        vmem_limit = int(min(_VMEM_CAP, max(16 * 1024 * 1024, 3 * block_bytes)))

        cost = pl.CostEstimate(
            flops=2 * B_pad * na_pad * ma_pad * D,
            transcendentals=0,
            bytes_accessed=in_itemsize * B_pad * (na_pad + ma_pad) * D
            + out_itemsize * B_pad * na_pad * ma_pad,
        )

        out = pl.pallas_call(
            _batched_gram_body,
            out_shape=jax.ShapeDtypeStruct((B_pad, na_pad, ma_pad), out_dtype),
            grid_spec=pltpu.PrefetchScalarGridSpec(
                num_scalar_prefetch=0,
                grid=(B_pad // Bt,),
                in_specs=[
                    pl.BlockSpec((Bt, na_pad, D), lambda i: (i, 0, 0)),
                    pl.BlockSpec((Bt, ma_pad, D), lambda i: (i, 0, 0)),
                ],
                out_specs=pl.BlockSpec((Bt, na_pad, ma_pad), lambda i: (i, 0, 0)),
            ),
            compiler_params=pltpu.CompilerParams(
                dimension_semantics=("parallel",),
                vmem_limit_bytes=vmem_limit,
            ),
            cost_estimate=cost,
        )(a, b)

        out = out[:B, :Na, :Ma].reshape(*batch_shape, Na, Ma)
        if swap:
            out = jnp.swapaxes(out, -1, -2)
        return out

    # ---------------- Path B ----------------
    def _prep(x, rows):
        bs = x.shape[:-2]
        if bs == batch_shape:
            return x.astype(compute_dtype).reshape(B, rows, D), False
        nb = math.prod(bs) if bs else 1
        if nb == 1:
            # Shared across the batch: keep one copy, broadcast via index_map.
            return x.astype(compute_dtype).reshape(1, rows, D), True
        xb = jnp.broadcast_to(x.astype(compute_dtype), (*batch_shape, rows, D))
        return xb.reshape(B, rows, D), False

    x1, x1_shared = _prep(X1, N)
    x2, x2_shared = _prep(X2, M)

    # Padding-aware tile selection (tiles up to 512; lanes kept 128-dense).
    tn, N_pad = _pick_tile(N, sub, 512, min(128, _round_up(N, sub)))
    tm, M_pad = _pick_tile(M, 128, 512, 128)
    if D <= 2048:
        tk, D_pad = D, D          # full-extent reduction block: no D padding
    else:
        tk, D_pad = _pick_tile(D, 128, 512, 128)

    def _maybe_pad(x, rows, rows_pad):
        pads = ((0, 0), (0, rows_pad - rows), (0, D_pad - D))
        if any(p[1] for p in pads):
            return jnp.pad(x, pads)
        return x

    x1p = _maybe_pad(x1, N, N_pad)
    x2p = _maybe_pad(x2, M, M_pad)

    body, scratch = _make_tiled_body(tn, tm, out_dtype)

    block_bytes = (tn * tk + tm * tk) * in_itemsize + tn * tm * out_itemsize
    if scratch:
        block_bytes += tn * tm * 4
    vmem_limit = int(min(_VMEM_CAP, max(16 * 1024 * 1024, 3 * block_bytes)))

    b1 = 1 if x1_shared else B
    b2 = 1 if x2_shared else B
    cost = pl.CostEstimate(
        flops=2 * B * N_pad * M_pad * D_pad,
        transcendentals=0,
        bytes_accessed=in_itemsize
        * (b1 * N_pad * D_pad * (M_pad // tm) + b2 * M_pad * D_pad * (N_pad // tn))
        + out_itemsize * B * N_pad * M_pad,
    )

    x1_map = (lambda b, i, j, k: (0, i, k)) if x1_shared else (lambda b, i, j, k: (b, i, k))
    x2_map = (lambda b, i, j, k: (0, j, k)) if x2_shared else (lambda b, i, j, k: (b, j, k))

    grid = (B, N_pad // tn, M_pad // tm, D_pad // tk)

    out = pl.pallas_call(
        body,
        out_shape=jax.ShapeDtypeStruct((B, N_pad, M_pad), out_dtype),
        grid_spec=pltpu.PrefetchScalarGridSpec(
            num_scalar_prefetch=0,
            grid=grid,
            in_specs=[
                pl.BlockSpec((1, tn, tk), x1_map),
                pl.BlockSpec((1, tm, tk), x2_map),
            ],
            out_specs=pl.BlockSpec((1, tn, tm), lambda b, i, j, k: (b, i, j)),
            scratch_shapes=scratch,
        ),
        compiler_params=pltpu.CompilerParams(
            dimension_semantics=("parallel", "parallel", "parallel", "arbitrary"),
            vmem_limit_bytes=vmem_limit,
        ),
        cost_estimate=cost,
    )(x1p, x2p)

    out = out[:, :N, :M]
    return out.reshape(*batch_shape, N, M)


if __name__ == "__main__":
    key = jax.random.PRNGKey(0)
    k1, k2, k3, k4, k5 = jax.random.split(key, 5)

    # Small case (Path A) — matches the module's contract.
    B, N, M, D = 2, 16, 8, 32
    X1 = jax.random.normal(k1, (B, N, D), dtype=jnp.float32)
    X2 = jax.random.normal(k2, (B, M, D), dtype=jnp.float32)

    K = linear_kernel(X1, X2)
    jax.block_until_ready(K)
    K_ref = jnp.matmul(X1, jnp.swapaxes(X2, -1, -2))
    assert K.shape == (B, N, M)
    assert jnp.allclose(K, K_ref, atol=1e-4, rtol=1e-4)

    # Small case with broadcast (X2 shared across the batch).
    X2s = jax.random.normal(k5, (M, D), dtype=jnp.float32)
    Kb = linear_kernel(X1, X2s)
    jax.block_until_ready(Kb)
    Kb_ref = jnp.matmul(X1, jnp.swapaxes(X2s, -1, -2))
    assert Kb.shape == (B, N, M)
    assert jnp.allclose(Kb, Kb_ref, atol=1e-4, rtol=1e-4)

    # Larger, non-aligned case exercising the tiled reduction path (B) with a
    # shared (un-batched) second operand handled via the index_map broadcast.
    B2, N2, M2, D2 = 2, 600, 200, 700
    Y1 = jax.random.normal(k3, (B2, N2, D2), dtype=jnp.float32)
    Y2 = jax.random.normal(k4, (M2, D2), dtype=jnp.float32)

    K2 = linear_kernel(Y1, Y2)
    jax.block_until_ready(K2)
    K2_ref = jnp.matmul(
        Y1, jnp.swapaxes(Y2, -1, -2), precision=jax.lax.Precision.HIGHEST
    )
    assert K2.shape == (B2, N2, M2)
    assert jnp.allclose(K2, K2_ref, atol=2e-2, rtol=2e-2)

    print("KERNEL_OK")
</pallas_src>

<mosaic_0001>
module attributes {stable_mosaic.version = 11 : i64} {
  func.func @_batched_gram_body(%arg0: i32, %arg1: memref<1x8x32xf32, #tpu.memory_space<vmem>>, %arg2: memref<1x128x32xf32, #tpu.memory_space<vmem>>, %arg3: memref<1x8x128xf32, #tpu.memory_space<vmem>>) attributes {dimension_semantics = [#tpu.dimension_semantics<parallel>], iteration_bounds = array<i64: 2>, scalar_prefetch = 0 : i64, scratch_operands = 0 : i64, tpu.core_type = #tpu.core_type<tc>, window_params = [{transform_indices = @transform_0, window_bounds = array<i64: 1, 8, 32>}, {transform_indices = @transform_1, window_bounds = array<i64: 1, 128, 32>}, {transform_indices = @transform_2, window_bounds = array<i64: 1, 8, 128>}]} {
    %c0 = arith.constant 0 : index
    %c0_0 = arith.constant 0 : index
    %c0_1 = arith.constant 0 : index
    %0 = vector.load %arg1[%c0, %c0_0, %c0_1] : memref<1x8x32xf32, #tpu.memory_space<vmem>>, vector<1x8x32xf32>
    %c0_2 = arith.constant 0 : index
    %c0_3 = arith.constant 0 : index
    %c0_4 = arith.constant 0 : index
    %1 = vector.load %arg2[%c0_2, %c0_3, %c0_4] : memref<1x128x32xf32, #tpu.memory_space<vmem>>, vector<1x128x32xf32>
    %cst = arith.constant dense<0.000000e+00> : vector<1x8x128xf32>
    %2 = tpu.matmul %0, %1, %cst {dimension_numbers = #tpu.dot_dimension_numbers<[2], [2], [1], [1], [0, 0, 0, 1, 1, 1], [0], [0]>} : vector<1x8x32xf32>, vector<1x128x32xf32>, vector<1x8x128xf32> -> vector<1x8x128xf32>
    %c0_5 = arith.constant 0 : index
    %c0_6 = arith.constant 0 : index
    %c0_7 = arith.constant 0 : index
    %3 = vector.load %arg3[%c0_5, %c0_6, %c0_7] : memref<1x8x128xf32, #tpu.memory_space<vmem>>, vector<1x8x128xf32>
    tpu.vector_store %arg3[%c0_5, %c0_6, %c0_7], %2 {strides = array<i32>} : memref<1x8x128xf32, #tpu.memory_space<vmem>>, vector<1x8x128xf32>,
    return
  }
  func.func @transform_0(%arg0: i32) -> (i32, i32, i32) {
    %c0_i32 = arith.constant 0 : i32
    %c0_i32_0 = arith.constant 0 : i32
    %c0_i32_1 = arith.constant 0 : i32
    return %arg0, %c0_i32, %c0_i32_0 : i32, i32, i32
  }
  func.func @transform_1(%arg0: i32) -> (i32, i32, i32) {
    %c0_i32 = arith.constant 0 : i32
    %c0_i32_0 = arith.constant 0 : i32
    %c0_i32_1 = arith.constant 0 : i32
    return %arg0, %c0_i32, %c0_i32_0 : i32, i32, i32
  }
  func.func @transform_2(%arg0: i32) -> (i32, i32, i32) {
    %c0_i32 = arith.constant 0 : i32
    %c0_i32_0 = arith.constant 0 : i32
    %c0_i32_1 = arith.constant 0 : i32
    return %arg0, %c0_i32, %c0_i32_0 : i32, i32, i32
  }
}

</mosaic_0001>

<bundles_post_ra>
// kernel: tpu_custom_call.1
= control target key start
LH: loop header
LB: loop body
LE: loop exit
PB: predicated region body
PF: predicated region fallthrough
CT: control target
= control target key end

     0   :  { %7 = vsyncpa [#allocation3], 0  ;;  %s771_s0 = inlined_call_operand.vmem [shape: f32[2,8,32], index: 0, kind: input, shape index: {}]   ;;  %s772_s1 = inlined_call_operand.vmem [shape: f32[2,128,32], index: 1, kind: input, shape index: {}]   ;;  %s773_s2 = inlined_call_operand.hbm [shape: f32[2,8,128], index: 2, kind: output, shape index: {}]  }
   0x1   :  { %9 = vsyncpa [#allocation3 + $0x1], 0  ;;  %s623_s9 = smov 0   ;;  %s625_s10 = smov 0  }
   0x2   :  { %s627_s11 = smov 0   ;;  %s629_s12 = smov 0  }
   0x3 LB: > { %s644_s13 = sadd.s32 4294967295, %s602_s12   ;;  %s384_s14 = sadd.s32 4294967294, %s602_s12   ;;  %s602_s12 = sphi %s629_s12, %s781_s12   ;;  %s598_s11 = sphi %s627_s11, %s780_s11   ;;  %s594_s10 = sphi %s625_s10, %s779_s10   ;;  %s590_s9 = sphi %s623_s9, %s778_s9  }
   0x4   : > { %s648_s15 = sadd.s32 1, %s602_s12   ;;  %s74_s16 = sadd.s32 1, %s598_s11 }
   0x5   : > { %s71_s17 = ssub.s32 %s602_s12, %s648_s15  ;;  %p84_p0 = scmp.ne.s32.totalorder %s598_s11, %s594_s10 }
   0x6   : > { %p72_p1 = scmp.eq.s32.totalorder %s71_s17, 0  ;;  %p85_p2 = scmp.eq.s32.totalorder %s644_s13, 1 }
   0x7   : > { %p90_p3 = scmp.ne.s32.totalorder %s594_s10, %s590_s9  ;;  %p91_p4 = scmp.eq.s32.totalorder %s384_s14, 1 }
   0x8   : > { %s659_s18 = scalar_select %p72_p1, %s598_s11, %s74_s16  }
   0x9   : > { %p661_p5 = por %p85_p2, %p84_p0  ;;  %p665_p6 = por %p91_p4, %p90_p3 }
   0xa   : > { %p387_p7 = scmp.ge.s32.totalorder %s602_s12, 1  ;;  %p124_p8 = scmp.lt.s32.totalorder %s602_s12, 3 }
   0xc   : > { %p125_p9 = pnand %p387_p7, %p124_p8 }
   0xd   : > { %p150_p10 = scmp.lt.s32.totalorder (!%p125_p9), %s644_s13, 1  ;;  %v604_v0 = vmov (!%p125_p9), 0.0|0.0   ;;  %vm605_vm0 = vmmov (!%p125_p9), 0   ;;  %v606_v1 = vmov (!%p125_p9), 0.0   ;;  %vm176_vm1 = vcmask (!%p125_p9), 261120   ;;  %s147_s30 = sand.u32 (!%p125_p9), 1, %s594_s10  }
   0xe   : > { %128 = sbr.rel (%p125_p9) target bundleno = 317 (0x13d), region = 28  ;;  %466 = vmatprep.subr.bf16.mxu0 (!%p125_p9), %v604_v0  ;;  %463 = vmatprep.mubr.msk.f32.mxu0 (!%p125_p9), %vm605_vm0, %v606_v1  ;;  %vm685_vm2 = vmpackc.low (!%p125_p9), %vm176_vm1, %vm176_vm1  ;;  %s388_s3 = sshll.u32 (!%p125_p9), %s147_s30, 3 }
   0xf   : > { %s149_s4 = scalar_lea.vmem (!%p125_p9), [#allocation2], %s388_s3  ;;  %s410_s6 = sshll.u32 (!%p125_p9), %s644_s13, 7 }
  0x10   : > { %s313_s5 = sshll.u32 (!%p125_p9), %s149_s4, 4  ;;  %s731_s14 = scalar_lea.hbm (!%p125_p9), %s773_s2, %s410_s6  ;;  %s726_s5 = int_to_ptr.vmem [resolvable:$true] %s313_s5 }
  0x11   : > { %s300_s16 = scalar_lea.sflag (!%p125_p9), [#allocation3], %s147_s30  ;;  %s540_s17 = scalar_lea.vmem (!%p125_p9), %s726_s5, 128 }
  0x12   : > { %p541_p11 = scmp.ne.s32.totalorder (!%p125_p9), %s726_s5, %s540_s17 }
  0x14   : > { %p542_p12 = pnand (!%p125_p9), %p541_p11, %p661_p5 }
  0x15   : > { %s673_s21 = scalar_select %p150_p10, %s644_s13, 1 }
  0x16   : > { %p543_p13 = pneg %p542_p12  ;;  %s607_s13 = smov [#allocation2]  }
  0x17   : > { %s413_s22 = sshll.u32 %s673_s21, 7  ;;  %s389_s26 = sshll.u32 %s673_s21, 3 }
  0x18   : > { %s679_s25 = scalar_lea.vmem %s772_s1, %s413_s22  ;;  %s153_s29 = scalar_lea.vmem %s771_s0, %s389_s26 }
  0x19   : > { %v160_v2 = vld [vmem:[%s679_s25] sm:$0xff]  ;;  %v161_v3 = vld [vmem:[%s679_s25 + $0x8] sm:$0xff]  ;;  %v162_v6 = vld [vmem:[%s679_s25 + $0x10] sm:$0xff]  ;;  %s544_s21 = sshll.u32 %s607_s13, 4  ;;  %s545_s21 = int_to_ptr.vmem [resolvable:$false] %s544_s21 }
  0x1a   : > { %v467_v5 = vpack.c.bf16 %v161_v3, %v160_v2  ;;  %v163_v7 = vld [vmem:[%s679_s25 + $0x18] sm:$0xff]  ;;  %v164_v9 = vld [vmem:[%s679_s25 + $0x20] sm:$0xff]  ;;  %v165_v10 = vld [vmem:[%s679_s25 + $0x28] sm:$0xff]  ;;  %s546_s22 = scalar_lea.vmem %s545_s21, 256  ;;  %p547_p0 = scmp.lt.s32.totalorder %s726_s5, %s545_s21 }
  0x1b   : > { %v471_v8 = vpack.c.bf16 %v163_v7, %v162_v6  ;;  %v475_v11 = vpack.c.bf16 %v165_v10, %v164_v9  ;;  %v166_v12 = vld [vmem:[%s679_s25 + $0x30] sm:$0xff]  ;;  %v167_v13 = vld [vmem:[%s679_s25 + $0x38] sm:$0xff]  ;;  %v168_v15 = vld [vmem:[%s679_s25 + $0x40] sm:$0xff]  ;;  %p548_p1 = scmp.lt.s32.totalorder %s546_s22, %s540_s17 }
  0x1c   : > { %469 = vmatpush3.bf16.xpose.msk.msra.mxu0 %vm685_vm2, %v467_v5  ;;  %v479_v14 = vpack.c.bf16 %v167_v13, %v166_v12  ;;  %v169_v16 = vld [vmem:[%s679_s25 + $0x48] sm:$0xff]  ;;  %v170_v18 = vld [vmem:[%s679_s25 + $0x50] sm:$0xff]  ;;  %v171_v19 = vld [vmem:[%s679_s25 + $0x58] sm:$0xff] }
  0x1d   : > { %470 = vmatprep.subr.bf16.mxu0 %v604_v0  ;;  %v483_v17 = vpack.c.bf16 %v169_v16, %v168_v15  ;;  %v487_v20 = vpack.c.bf16 %v171_v19, %v170_v18  ;;  %v172_v21 = vld [vmem:[%s679_s25 + $0x60] sm:$0xff]  ;;  %v173_v22 = vld [vmem:[%s679_s25 + $0x68] sm:$0xff]  ;;  %v174_v24 = vld [vmem:[%s679_s25 + $0x70] sm:$0xff]  ;;  %p549_p2 = por %p548_p1, %p547_p0 }
  0x1e   : > { %v491_v23 = vpack.c.bf16 %v173_v22, %v172_v21  ;;  %v175_v25 = vld [vmem:[%s679_s25 + $0x78] sm:$0xff]  ;;  %v159_v27 = vld [vmem:[%s153_s29] sm:$0xff] }
  0x1f   : > { %v495_v26 = vpack.c.bf16 %v175_v25, %v174_v24  ;;  %p550_p3 = pnand %p549_p2, %p543_p13 }
  0x24   : > { %473 = vmatpush3.bf16.xpose.msk.msra.mxu0 %vm685_vm2, %v471_v8 }
  0x25   : > { %474 = vmatprep.subr.bf16.mxu0 %v604_v0 }
  0x2c   : > { %477 = vmatpush3.bf16.xpose.msk.msra.mxu0 %vm685_vm2, %v475_v11 }
  0x2d   : > { %478 = vmatprep.subr.bf16.mxu0 %v604_v0 }
  0x34   : > { %481 = vmatpush3.bf16.xpose.msk.msra.mxu0 %vm685_vm2, %v479_v14 }
  0x35   : > { %482 = vmatprep.subr.bf16.mxu0 %v604_v0 }
  0x3c   : > { %485 = vmatpush3.bf16.xpose.msk.msra.mxu0 %vm685_vm2, %v483_v17 }
  0x3d   : > { %486 = vmatprep.subr.bf16.mxu0 %v604_v0 }
  0x44   : > { %489 = vmatpush3.bf16.xpose.msk.msra.mxu0 %vm685_vm2, %v487_v20 }
  0x45   : > { %490 = vmatprep.subr.bf16.mxu0 %v604_v0 }
  0x4c   : > { %493 = vmatpush3.bf16.xpose.msk.msra.mxu0 %vm685_vm2, %v491_v23 }
  0x4d   : > { %494 = vmatprep.subr.bf16.mxu0 %v604_v0 }
  0x54   : > { %497 = vmatpush3.bf16.xpose.msk.msra.mxu0 %vm685_vm2, %v495_v26 }
  0x5b   : > { %464 = vmatmul.mubr.msk.f32.vlgmr.msra.gmra.mrb[0].mxu0 %vm176_vm1, %v159_v27 }
 0x12e   : > { %v294_v28 = vpop.f32.mrb[0].mxu0 }
 0x12f   : > { %298 = vst [vmem:[%s149_s4] sm:$0xff] %v294_v28  ;;  %v465_v29 = vpop.f32.mrb[1].mxu0 }
 0x130   : > { %553 = shalt.err (!%p550_p3)
}
 0x131   : > { %s554_s23 = scalar_lea.hbm %s731_s14, 128  ;;  %s558_s26 = scalar_lea.hbm %s773_s2, 256 }
 0x132   : > { %p555_p4 = scmp.ne.s32.totalorder %s731_s14, %s554_s23  ;;  %p559_p9 = scmp.lt.u32.totalorder %s731_s14, %s773_s2 }
 0x133   : > { %p560_p10 = scmp.lt.u32.totalorder %s558_s26, %s554_s23  ;;  %p562_p12 = scmp.lt.u32.totalorder %s554_s23, %s731_s14 }
 0x134   : > { %p556_p7 = pnand %p555_p4, %p661_p5 }
 0x135   : > { %p561_p11 = por %p560_p10, %p559_p9 }
 0x136   : > { %p557_p8 = pneg %p556_p7 }
 0x137   : > { %p563_p13 = por %p562_p12, %p561_p11 }
 0x139   : > { %p564_p0 = pnand %p563_p13, %p557_p8 }
 0x13b   : > { %567 = shalt.err (!%p564_p0)
}
 0x13c   : > { %498 = dma.vmem_to_hbm [thread:$0]  (%p661_p5), %s726_s5, 128, %s731_s14, %s300_s16  }
 0x13d PF: > { %p504_p1 = scmp.ge.s32.totalorder %s602_s12, 2  ;;  %s325_s29 = sand.u32 1, %s590_s9  }
 0x13e   : > { %s326_s30 = scalar_lea.sflag [#allocation3], %s325_s29 }
 0x13f   : > { %p501_p2 = pnand %p504_p1, %p665_p6 }
 0x141   : > { %585 = dma.done.wait (!%p501_p2), %s326_s30, 128  }
 0x142   : > { %587 = vsyncadd (!%p501_p2), %s326_s30, 4294967168  ;;  %p12_p3 = scmp.ge.s32.totalorder %s648_s15, 4   ;;  %s778_s9 = smov %s594_s10 }
 0x143   : > { %s779_s10 = smov %s598_s11  ;;  %s780_s11 = smov %s659_s18 }
 0x144   : > { %s781_s12 = smov %s648_s15  ;;  %14 = sbr.rel (!%p12_p3) target bundleno = 3 (0x3), region = 66 }
 0x14b   :  { %331 = vsyncpa [#allocation3], 1 }
 0x14c   :  { %333 = vsyncpa [#allocation3 + $0x1], 1 }

</bundles_post_ra>
